<compile_context>
chip_gen: v5e
topology: v5e:2x2
jax: 0.10.0
libtpu: 0.0.40
codegen_flags: <defaults>
</compile_context>

<pallas_src>
import math
import functools

import jax
import jax.numpy as jnp
from jax.experimental import pallas as pl
from jax.experimental.pallas import tpu as pltpu


# --------------------------------------------------------------------------
# Kernel 1: fused K|V projection, computed ONCE per layer.
# --------------------------------------------------------------------------
def _kv_proj_kernel(x_ref, wkv_ref, bkv_ref, o_ref):
    x = x_ref[0].astype(jnp.bfloat16)                        # (Ts, D)
    kv = jnp.dot(x, wkv_ref[...],
                 preferred_element_type=jnp.float32) + bkv_ref[...]
    o_ref[0] = kv.astype(o_ref.dtype)                        # bf16 (Ts, 2D)


# --------------------------------------------------------------------------
# Kernel 2: attention (opposite-half keys) + output proj + LN1 + FFN + LN2
# for one (batch, query-tile) block.
# --------------------------------------------------------------------------
def _attn_ffn_kernel(xq_ref, kv_ref,
                     wq_ref, bq_ref, wo_ref, bo_ref,
                     g1_ref, be1_ref,
                     w1_ref, b1_ref, w2_ref, b2_ref,
                     g2_ref, be2_ref,
                     o_ref, *, nhead, masked, s_half):
    xq = xq_ref[0]                    # (Tq, D)  f32 query tile (residual path)
    kv = kv_ref[0]                    # (Sk, 2D) bf16 keys|values this tile sees
    Tq, D = xq.shape
    Sk = kv.shape[0]
    hd = D // nhead

    # --- Q projection (1/sqrt(hd) pre-folded into wq_t / bq_s), bf16 matmul ---
    q = jnp.dot(xq.astype(jnp.bfloat16), wq_ref[...],
                preferred_element_type=jnp.float32) + bq_ref[...]
    q_bf = q.astype(jnp.bfloat16)

    if masked:
        # Fallback only: query tile may straddle the half boundary, so apply
        # the block-diagonal mask elementwise (keys = full sequence here).
        q0 = pl.program_id(1) * Tq
        q_pos = q0 + jax.lax.broadcasted_iota(jnp.int32, (Tq, Sk), 0)
        k_pos = jax.lax.broadcasted_iota(jnp.int32, (Tq, Sk), 1)
        blocked = (q_pos < s_half) == (k_pos < s_half)       # same half -> mask

    # --- attention; per-head output projection fused into a lane-dense
    #     (Tq, D) accumulator (no concat of hd-wide slices) ---
    wo = wo_ref[...]                                         # (D, D) bf16
    attn = jnp.zeros((Tq, D), jnp.float32)
    for h in range(nhead):                                   # static unroll
        lo, hi = h * hd, (h + 1) * hd
        qh = q_bf[:, lo:hi]                                  # (Tq, hd) bf16
        kh = kv[:, lo:hi]                                    # (Sk, hd) bf16
        vh = kv[:, D + lo:D + hi]                            # (Sk, hd) bf16
        s = jax.lax.dot_general(qh, kh, (((1,), (1,)), ((), ())),
                                preferred_element_type=jnp.float32)  # (Tq, Sk)
        if masked:
            s = jnp.where(blocked, -1e30, s)
        m = jnp.max(s, axis=-1, keepdims=True)               # f32 softmax
        p = jnp.exp(s - m)
        p = p * pl.reciprocal(jnp.sum(p, axis=-1, keepdims=True), approx=True)
        hv = jnp.dot(p.astype(jnp.bfloat16), vh,
                     preferred_element_type=jnp.float32)     # (Tq, hd)
        attn = attn + jnp.dot(hv.astype(jnp.bfloat16), wo[lo:hi, :],
                              preferred_element_type=jnp.float32)
    attn = attn + bo_ref[...]

    # --- residual + LayerNorm 1 (post-norm, eps=1e-5, biased variance), f32 ---
    y = xq + attn
    mu = jnp.mean(y, axis=-1, keepdims=True)
    var = jnp.mean((y - mu) ** 2, axis=-1, keepdims=True)
    y = (y - mu) * jax.lax.rsqrt(var + 1e-5) * g1_ref[...] + be1_ref[...]

    # --- feed-forward: linear -> ReLU -> linear (dropout = 0.0 -> identity) ---
    h1 = jnp.maximum(
        jnp.dot(y.astype(jnp.bfloat16), w1_ref[...],
                preferred_element_type=jnp.float32) + b1_ref[...], 0.0)
    ff = jnp.dot(h1.astype(jnp.bfloat16), w2_ref[...],
                 preferred_element_type=jnp.float32) + b2_ref[...]

    # --- residual + LayerNorm 2 ---
    z = y + ff
    mu2 = jnp.mean(z, axis=-1, keepdims=True)
    var2 = jnp.mean((z - mu2) ** 2, axis=-1, keepdims=True)
    z = (z - mu2) * jax.lax.rsqrt(var2 + 1e-5) * g2_ref[...] + be2_ref[...]

    o_ref[0] = z.astype(o_ref.dtype)


# --------------------------------------------------------------------------
# Host-side wrappers
# --------------------------------------------------------------------------
def _choose_seq_tile(S):
    for t in (256, 128, 64, 32, 16, 8):
        if t <= S and S % t == 0:
            return t
    return S


def _choose_q_tile(S):
    """Pick a query tile that never straddles the half boundary (fast path)."""
    if S % 2 == 0:
        half = S // 2
        for t in (128, 256, 64, 32, 16, 8):
            if t <= half and half % t == 0:
                return t, True
        if half % 8 == 0:
            return half, True
    return S, False      # fallback: full-S tile + in-kernel elementwise mask


def encoder_layer_pallas(x, p, nhead):
    """Run one post-norm encoder layer. x: (B, S, D) f32. p: prepped weights."""
    B, S, D = x.shape
    d_hid = p["w1_t"].shape[1]

    # ---- 1) K|V projection, once per layer (B, S, 2D) bf16 ----
    ts = _choose_seq_tile(S)
    kv = pl.pallas_call(
        _kv_proj_kernel,
        out_shape=jax.ShapeDtypeStruct((B, S, 2 * D), jnp.bfloat16),
        grid=(B, S // ts),
        in_specs=[pl.BlockSpec((1, ts, D), lambda b, si: (b, si, 0)),
                  pl.BlockSpec((D, 2 * D), lambda b, si: (0, 0)),
                  pl.BlockSpec((1, 2 * D), lambda b, si: (0, 0))],
        out_specs=pl.BlockSpec((1, ts, 2 * D), lambda b, si: (b, si, 0)),
        compiler_params=pltpu.CompilerParams(
            dimension_semantics=("parallel", "parallel")),
    )(x, p["wkv_t"], p["bkv"])

    # ---- 2) attention + FFN over (batch, query tile) ----
    q_tile, half_path = _choose_q_tile(S)
    nq = S // q_tile
    half = S // 2
    if half_path:
        nq_half = half // q_tile
        # A query tile lies entirely in one half; fetch ONLY the opposite half
        # of K|V (the block-diagonal -inf mask applied structurally).
        kv_spec = pl.BlockSpec((1, half, 2 * D),
                               lambda b, qi: (b, 1 - (qi // nq_half), 0))
    else:
        kv_spec = pl.BlockSpec((1, S, 2 * D), lambda b, qi: (b, 0, 0))

    const = lambda shape: pl.BlockSpec(shape, lambda b, qi: (0,) * len(shape))
    kernel = functools.partial(_attn_ffn_kernel, nhead=nhead,
                               masked=not half_path, s_half=half)

    return pl.pallas_call(
        kernel,
        out_shape=jax.ShapeDtypeStruct((B, S, D), jnp.float32),
        grid=(B, nq),
        in_specs=[
            pl.BlockSpec((1, q_tile, D), lambda b, qi: (b, qi, 0)),  # x query tile
            kv_spec,                                                  # opposite-half KV
            const((D, D)), const((1, D)),                             # wq_t (scaled), bq_s
            const((D, D)), const((1, D)),                             # wo_t, bo
            const((1, D)), const((1, D)),                             # ln1 gamma, beta
            const((D, d_hid)), const((1, d_hid)),                     # w1_t, b1
            const((d_hid, D)), const((1, D)),                         # w2_t, b2
            const((1, D)), const((1, D)),                             # ln2 gamma, beta
        ],
        out_specs=pl.BlockSpec((1, q_tile, D), lambda b, qi: (b, qi, 0)),
        compiler_params=pltpu.CompilerParams(
            dimension_semantics=("parallel", "parallel"),
            # ~20 MiB working set at S=2048, D=512, d_hid=2048, Tq=128 (bf16
            # weights, half KV); 40 MiB leaves headroom and fits v7x's 64 MiB.
            vmem_limit_bytes=40 * 1024 * 1024,
        ),
    )(x, kv,
      p["wq_t"], p["bq_s"], p["wo_t"], p["bo"],
      p["g1"], p["be1"], p["w1_t"], p["b1"], p["w2_t"], p["b2"],
      p["g2"], p["be2"])


def transformer_encoder_pallas(src, layer_params, nhead):
    x = src
    for p in layer_params:
        x = encoder_layer_pallas(x, p, nhead)
    return x


# ---------------- host-side parameter construction / prep ----------------
def make_layer_params(key, d_model, d_hid):
    """Raw parameters in PyTorch orientation (Linear weight = (out, in))."""
    ks = jax.random.split(key, 8)
    u = lambda k, shape, s=0.1: jax.random.uniform(k, shape, jnp.float32, -s, s)
    return {
        "wq": u(ks[0], (d_model, d_model)), "bq": u(ks[1], (d_model,)),
        "wk": u(ks[2], (d_model, d_model)), "bk": u(ks[3], (d_model,)),
        "wv": u(ks[4], (d_model, d_model)), "bv": u(ks[5], (d_model,)),
        "wo": u(ks[6], (d_model, d_model)), "bo": jnp.zeros((d_model,), jnp.float32),
        "g1": jnp.ones((d_model,), jnp.float32), "be1": jnp.zeros((d_model,), jnp.float32),
        "w1": u(ks[7], (d_hid, d_model)), "b1": jnp.zeros((d_hid,), jnp.float32),
        "w2": u(jax.random.fold_in(key, 99), (d_model, d_hid)),
        "b2": jnp.zeros((d_model,), jnp.float32),
        "g2": jnp.ones((d_model,), jnp.float32), "be2": jnp.zeros((d_model,), jnp.float32),
    }


def prep_layer_params(p, nhead):
    """Pre-transpose / fuse / scale-fold weights; matmul weights stored bf16."""
    d_model = p["wq"].shape[0]
    scale = 1.0 / math.sqrt(d_model // nhead)
    r = lambda v: v.reshape(1, -1).astype(jnp.float32)
    bf = lambda v: v.astype(jnp.bfloat16)
    return {
        "wq_t": bf((p["wq"] * scale).T),                               # (D, D)
        "bq_s": r(p["bq"] * scale),                                    # (1, D)
        "wkv_t": bf(jnp.concatenate([p["wk"].T, p["wv"].T], axis=1)),  # (D, 2D)
        "bkv": r(jnp.concatenate([p["bk"], p["bv"]])),                 # (1, 2D)
        "wo_t": bf(p["wo"].T), "bo": r(p["bo"]),
        "g1": r(p["g1"]), "be1": r(p["be1"]),
        "w1_t": bf(p["w1"].T), "b1": r(p["b1"]),                       # (D, d_hid)
        "w2_t": bf(p["w2"].T), "b2": r(p["b2"]),                       # (d_hid, D)
        "g2": r(p["g2"]), "be2": r(p["be2"]),
    }


# -------- pure-JAX f32 reference (PyTorch semantics, raw params, explicit mask) --------
def _encoder_layer_ref(x, mask, p, nhead):
    B, S, D = x.shape
    hd = D // nhead
    scale = 1.0 / math.sqrt(hd)

    q = x @ p["wq"].T + p["bq"]
    k = x @ p["wk"].T + p["bk"]
    v = x @ p["wv"].T + p["bv"]
    q = q.reshape(B, S, nhead, hd).transpose(0, 2, 1, 3)
    k = k.reshape(B, S, nhead, hd).transpose(0, 2, 1, 3)
    v = v.reshape(B, S, nhead, hd).transpose(0, 2, 1, 3)
    s = jnp.einsum("bhqd,bhkd->bhqk", q * scale, k) + mask[None, None]
    a = jnp.einsum("bhqk,bhkd->bhqd", jax.nn.softmax(s, axis=-1), v)
    a = a.transpose(0, 2, 1, 3).reshape(B, S, D) @ p["wo"].T + p["bo"]

    def ln(t, g, b):
        mu = jnp.mean(t, axis=-1, keepdims=True)
        var = jnp.mean((t - mu) ** 2, axis=-1, keepdims=True)
        return (t - mu) * jax.lax.rsqrt(var + 1e-5) * g + b

    y = ln(x + a, p["g1"], p["be1"])
    ff = jnp.maximum(y @ p["w1"].T + p["b1"], 0.0) @ p["w2"].T + p["b2"]
    return ln(y + ff, p["g2"], p["be2"])


def _encoder_ref(src, mask, layer_params, nhead):
    x = src
    for p in layer_params:
        x = _encoder_layer_ref(x, mask, p, nhead)
    return x


if __name__ == "__main__":
    # Small shapes consistent with the module (real model: S=2048, even halves).
    batch, seq_len, d_model, nhead, d_hid, nlayers = 2, 16, 32, 4, 64, 2

    key = jax.random.PRNGKey(0)
    k_src, k_par = jax.random.split(key)
    src = jax.random.normal(k_src, (batch, seq_len, d_model), jnp.float32)

    raw_params = [make_layer_params(jax.random.fold_in(k_par, i), d_model, d_hid)
                  for i in range(nlayers)]
    kernel_params = [prep_layer_params(p, nhead) for p in raw_params]

    out = transformer_encoder_pallas(src, kernel_params, nhead)
    out = jax.block_until_ready(out)

    # reference block-diagonal -inf mask (scaled-down version of the 2048x2048)
    half = seq_len // 2
    mask = jnp.zeros((seq_len, seq_len), jnp.float32)
    mask = mask.at[:half, :half].set(-jnp.inf)
    mask = mask.at[half:, half:].set(-jnp.inf)
    ref = _encoder_ref(src, mask, raw_params, nhead)

    assert out.shape == (batch, seq_len, d_model)
    err = float(jnp.max(jnp.abs(out - ref)))
    assert err < 2e-2, f"mismatch vs JAX f32 reference: max abs err {err}"

    print("KERNEL_OK")
</pallas_src>

<mosaic_0001>
module attributes {stable_mosaic.version = 11 : i64} {
  func.func @_kv_proj_kernel(%arg0: i32, %arg1: i32, %arg2: memref<1x16x32xf32, #tpu.memory_space<vmem>>, %arg3: memref<32x64xbf16, #tpu.memory_space<vmem>>, %arg4: memref<1x64xf32, #tpu.memory_space<vmem>>, %arg5: memref<1x16x64xbf16, #tpu.memory_space<vmem>>) attributes {dimension_semantics = [#tpu.dimension_semantics<parallel>, #tpu.dimension_semantics<parallel>], iteration_bounds = array<i64: 2, 1>, scalar_prefetch = 0 : i64, scratch_operands = 0 : i64, tpu.core_type = #tpu.core_type<tc>, window_params = [{transform_indices = @transform_0, window_bounds = array<i64: 1, 16, 32>}, {pipeline_mode = #tpu.pipeline_mode<synchronous>, transform_indices = @transform_1, window_bounds = array<i64: 32, 64>}, {pipeline_mode = #tpu.pipeline_mode<synchronous>, transform_indices = @transform_2, window_bounds = array<i64: 1, 64>}, {transform_indices = @transform_3, window_bounds = array<i64: 1, 16, 64>}]} {
    %c0 = arith.constant 0 : index
    %c0_0 = arith.constant 0 : index
    %c0_1 = arith.constant 0 : index
    %0 = vector.load %arg2[%c0, %c0_0, %c0_1] : memref<1x16x32xf32, #tpu.memory_space<vmem>>, vector<1x16x32xf32>
    %1 = vector.shape_cast %0 : vector<1x16x32xf32> to vector<16x32xf32>
    %2 = arith.truncf %1 : vector<16x32xf32> to vector<16x32xbf16>
    %c0_2 = arith.constant 0 : index
    %c0_3 = arith.constant 0 : index
    %3 = vector.load %arg3[%c0_2, %c0_3] : memref<32x64xbf16, #tpu.memory_space<vmem>>, vector<32x64xbf16>
    %cst = arith.constant dense<0.000000e+00> : vector<16x64xf32>
    %4 = tpu.matmul %2, %3, %cst {dimension_numbers = #tpu.dot_dimension_numbers<[1], [0], [0], [1], [0, 0, 1, 1], [], []>} : vector<16x32xbf16>, vector<32x64xbf16>, vector<16x64xf32> -> vector<16x64xf32>
    %c0_4 = arith.constant 0 : index
    %c0_5 = arith.constant 0 : index
    %5 = vector.load %arg4[%c0_4, %c0_5] : memref<1x64xf32, #tpu.memory_space<vmem>>, vector<1x64xf32>
    %6 = vector.broadcast %5 : vector<1x64xf32> to vector<16x64xf32>
    %7 = arith.addf %4, %6 : vector<16x64xf32>
    %8 = arith.truncf %7 : vector<16x64xf32> to vector<16x64xbf16>
    %c0_6 = arith.constant 0 : index
    %c0_7 = arith.constant 0 : index
    %c0_8 = arith.constant 0 : index
    %9 = vector.load %arg5[%c0_6, %c0_7, %c0_8] : memref<1x16x64xbf16, #tpu.memory_space<vmem>>, vector<1x16x64xbf16>
    %10 = vector.shape_cast %9 : vector<1x16x64xbf16> to vector<16x64xbf16>
    %11 = vector.shape_cast %8 : vector<16x64xbf16> to vector<1x16x64xbf16>
    tpu.vector_store %arg5[%c0_6, %c0_7, %c0_8], %11 {strides = array<i32>} : memref<1x16x64xbf16, #tpu.memory_space<vmem>>, vector<1x16x64xbf16>,
    return
  }
  func.func @transform_0(%arg0: i32, %arg1: i32) -> (i32, i32, i32) {
    %c0_i32 = arith.constant 0 : i32
    %c0_i32_0 = arith.constant 0 : i32
    return %arg0, %arg1, %c0_i32 : i32, i32, i32
  }
  func.func @transform_1(%arg0: i32, %arg1: i32) -> (i32, i32) {
    %c0_i32 = arith.constant 0 : i32
    %c0_i32_0 = arith.constant 0 : i32
    %c0_i32_1 = arith.constant 0 : i32
    return %c0_i32, %c0_i32_0 : i32, i32
  }
  func.func @transform_2(%arg0: i32, %arg1: i32) -> (i32, i32) {
    %c0_i32 = arith.constant 0 : i32
    %c0_i32_0 = arith.constant 0 : i32
    %c0_i32_1 = arith.constant 0 : i32
    return %c0_i32, %c0_i32_0 : i32, i32
  }
  func.func @transform_3(%arg0: i32, %arg1: i32) -> (i32, i32, i32) {
    %c0_i32 = arith.constant 0 : i32
    %c0_i32_0 = arith.constant 0 : i32
    return %arg0, %arg1, %c0_i32 : i32, i32, i32
  }
}

</mosaic_0001>

<bundles_post_ra>
// kernel: tpu_custom_call.1
= control target key start
LH: loop header
LB: loop body
LE: loop exit
PB: predicated region body
PF: predicated region fallthrough
CT: control target
= control target key end

     0   :  { %s828_s0 = inlined_call_operand.hbm [shape: f32[2,16,32], index: 0, kind: input, shape index: {}]   ;;  %s829_s1 = inlined_call_operand.hbm [shape: bf16[32,64], index: 1, kind: input, shape index: {}]   ;;  %s830_s2 = inlined_call_operand.vmem [shape: f32[1,64], index: 2, kind: input, shape index: {}]   ;;  %s831_s3 = inlined_call_operand.hbm [shape: bf16[2,16,64], index: 3, kind: output, shape index: {}]  }
   0x1   :  { %832 = sst [smem:[#allocation11_spill]] %s829_s1 }
   0x2   :  { %8 = vsyncpa [#allocation3], 0 }
   0x3   :  { %10 = vsyncpa [#allocation3 + $0x1], 0 }
   0x4   :  { %11 = vsyncpa [#allocation6], 0 }
   0x5   :  { %12 = vsyncpa [#allocation4], 0 }
   0x6   :  { %14 = vsyncpa [#allocation4 + $0x1], 0  ;;  %s675_s12 = smov 0   ;;  %s677_s13 = smov 0  }
   0x7   :  { %s679_s14 = smov 0   ;;  %s681_s15 = smov 0  }
   0x8   :  { %s683_s16 = smov 0   ;;  %s685_s17 = smov 0  }
   0x9 LB: > { %s390_s18 = sadd.s32 4294967295, %s646_s17   ;;  %s391_s19 = sadd.s32 4294967294, %s646_s17   ;;  %s646_s17 = sphi %s685_s17, %s20_s17   ;;  %s642_s16 = sphi %s683_s16, %s845_s16   ;;  %s638_s15 = sphi %s681_s15, %s844_s15   ;;  %s634_s14 = sphi %s679_s14, %s843_s14   ;;  %s630_s13 = sphi %s677_s13, %s842_s13   ;;  %s626_s12 = sphi %s675_s12, %s841_s12  }
   0xa   : > { %p54_p0 = scmp.ne.s32.totalorder %s630_s13, %s626_s12  ;;  %p709_p1 = scmp.eq.s32.totalorder %s390_s18, 0 }
   0xb   : > { %p713_p2 = scmp.eq.s32.totalorder %s390_s18, 1  ;;  %p128_p3 = scmp.eq.s32.totalorder %s391_s19, 1 }
   0xc   : > { %p719_p4 = por %p709_p1, %p54_p0  ;;  %p392_p5 = scmp.ge.s32.totalorder %s646_s17, 1 }
   0xd   : > { %p724_p6 = por %p128_p3, %p54_p0  ;;  %p135_p7 = scmp.lt.s32.totalorder %s646_s17, 3 }
   0xe   : > { %s837_s1 = sld [smem:[#allocation11_spill]]  ;;  %s648_s28 = smov [#allocation5]  }
   0xf   : > { %p732_p8 = pnand %p392_p5, %p135_p7  ;;  %s148_s29 = sshll.u32 %s648_s28, 4  ;;  %s149_s29 = int_to_ptr.vmem [resolvable:$true] %s148_s29 }
  0x10   : > { %p394_p11 = scmp.ge.s32.totalorder %s646_s17, 2  ;;  %s649_s30 = smov 64  }
  0x11   : > { %p428_p9 = pneg %p732_p8  ;;  %s650_s4 = smov 4  }
  0x12   : > { %s32_s5 = sadd.s32 1, %s642_s16  ;;  %s41_s6 = sadd.s32 1, %s634_s14 }
  0x13   : > { %p429_p10 = pnand %p428_p9, %p709_p1  ;;  %p34_p12 = scmp.ge.s32.totalorder %s32_s5, 2 }
  0x14   : > { %s146_s26 = sshll.u32 %s837_s1, 4  ;;  %p48_p13 = scmp.ne.s32.totalorder %s634_s14, %s630_s13  ;;  %s147_s26 = int_to_ptr.hbm [resolvable:$true] %s146_s26 }
  0x15   : > { %431 = dma.hbm_to_vmem [thread:$0]  (!%p429_p10), %s147_s26, 256, %s149_s29, [#allocation6], %s649_s30, %s649_s30, %s650_s4  }
  0x16   : > { %p49_p0 = scmp.eq.s32.totalorder %s646_s17, 0  ;;  %s847_s5 = smov (%p34_p12, %s32_s5), 0 }
  0x17   : > { %p754_p5 = por %p713_p2, %p48_p13  ;;  %s36_s9 = ssub.s32 %s642_s16, %s847_s5 }
  0x18   : > { %p748_p3 = por %p49_p0, %p48_p13  ;;  %p441_p7 = scmp.lt.s32.totalorder %s646_s17, 2 }
  0x19   : > { %p39_p9 = scmp.eq.s32.totalorder %s36_s9, 0  ;;  %s165_s10 = sand.u32 1, %s634_s14  }
  0x1a   : > { %s395_s11 = sshll.u32 %s165_s10, 4  ;;  %s416_s19 = sshll.u32 %s642_s16, 4 }
  0x1b   : > { %s763_s18 = scalar_select %p39_p9, %s634_s14, %s41_s6  }
  0x1c   : > { %s176_s26 = scalar_lea.hbm %s828_s0, %s416_s19  ;;  %s169_s28 = scalar_lea.vmem [#allocation2], %s395_s11 }
  0x1d   : > { %s179_s29 = sshll.u32 %s169_s28, 4  ;;  %s177_s21 = sshll.u32 %s176_s26, 4  ;;  %s180_s29 = int_to_ptr.vmem [resolvable:$true] %s179_s29  ;;  %s178_s21 = int_to_ptr.hbm [resolvable:$true] %s177_s21 }
  0x1e   : > { %p433_p2 = pnand %p441_p7, %p748_p3  ;;  %s166_s30 = scalar_lea.sflag [#allocation3], %s165_s10 }
  0x1f   : > { %s651_s4 = smov 128   ;;  %s652_s1 = smov 8  }
  0x20   : > { %435 = dma.hbm_to_vmem [thread:$0]  (!%p433_p2), %s178_s21, 256, %s180_s29, %s166_s30, %s651_s4, %s651_s4, %s652_s1  }
  0x21   : > { %191 = sbr.rel (%p732_p8) target bundleno = 191 (0xbf), region = 32  ;;  %s774_s6 = sand.u32 (!%p732_p8), 1, %s630_s13  }
  0x22   : > { %s399_s9 = sshll.u32 (!%p732_p8), %s774_s6, 4  ;;  %s194_s11 = scalar_lea.sflag (!%p732_p8), [#allocation3], %s774_s6 }
  0x23   : > { %s197_s19 = scalar_lea.vmem (!%p732_p8), [#allocation2], %s399_s9 }
  0x26   : > { %613 = dma.done.wait (%p719_p4), %s194_s11, 256  }
  0x27   : > { %615 = vsyncadd (%p719_p4), %s194_s11, 4294967040 }
  0x28   : > { %617 = dma.done.wait (%p709_p1), [#allocation6], 256  }
  0x29   : > { %619 = vsyncadd (%p709_p1), [#allocation6], 4294967040  ;;  %v418_v0 = vld [vmem:[#allocation5 + $0x8] sm:$0xff]  ;;  %v417_v1 = vld [vmem:[#allocation5] sm:$0xff]  ;;  %vm252_vm0 = vcmask 261120   ;;  %s401_s27 = sshll.u32 %s774_s6, 3 }
  0x2a   : > { %262 = vmatpush.bf16.msra.mxu0 %v418_v0  ;;  %v229_v2 = vld [vmem:[%s197_s19] sm:$0xff]  ;;  %v230_v3 = vld [vmem:[%s197_s19 + $0x8] sm:$0xff]  ;;  %s419_s20 = sshll.u32 %s638_s15, 3  ;;  %vm272_vm1 = vcmask 519168   ;;  %s225_s25 = scalar_lea.vmem [#allocation7], %s401_s27 }
  0x2b   : > { %v231_v4 = vpack.c.bf16 %v230_v3, %v229_v2  ;;  %v499_v5 = vld [vmem:[%s830_s2] ss:$0 sm:$0xff]  ;;  %s289_s24 = scalar_lea.hbm %s831_s3, %s419_s20  ;;  %s290_s26 = sshll.u32 %s225_s25, 4  ;;  %s291_s26 = int_to_ptr.vmem [resolvable:$true] %s290_s26 }
  0x2c   : > { %s292_s28 = sshll.u32 %s289_s24, 4  ;;  %s276_s29 = scalar_lea.sflag [#allocation4], %s774_s6  ;;  %s293_s28 = int_to_ptr.hbm [resolvable:$true] %s292_s28 }
  0x2d   : > { %s574_s21 = sshra.s32 %s293_s28, 4  ;;  %s580_s9 = scalar_lea.hbm %s831_s3, 16  ;;  %s575_s21 = int_to_ptr.hbm [resolvable:$true] %s574_s21 }
  0x2e   : > { %263 = vmatpush.bf16.msra.mxu0 %v417_v1  ;;  %s576_s15 = scalar_lea.hbm %s575_s21, 8  ;;  %p581_p10 = scmp.lt.s32.totalorder %s575_s21, %s831_s3 }
  0x2f   : > { %p577_p1 = scmp.ne.s32.totalorder %s575_s21, %s576_s15  ;;  %p582_p12 = scmp.lt.s32.totalorder %s580_s9, %s576_s15 }
  0x31   : > { %410 = vmatmul.msk.bf16.vlgmr.msra.gmra.mxu0 %vm252_vm0, %v231_v4  ;;  %p578_p4 = pnand %p577_p1, %p754_p5  ;;  %p583_p13 = por %p582_p12, %p581_p10 }
  0x33   : > { %p579_p8 = pneg %p578_p4 }
  0x35   : > { %p584_p0 = pnand %p583_p13, %p579_p8 }
  0xae   : > { %v265_v6 = vpop.f32.mrf.mxu0 }
  0xaf   : > { %v266_v7 = vadd.f32 %v499_v5, %v265_v6 }
  0xb1   : > { %v270_v8 = vpack.c.bf16 %v266_v7, %v266_v7 }
  0xb3   : > { %273 = vst.msk [vmem:[%s225_s25] sm:$0xf] %vm272_vm1, %v270_v8 }
  0xb6   : > { %v267_v9 = vpop.f32.mrf.mxu0 }
  0xb7   : > { %v268_v10 = vadd.f32 %v499_v5, %v267_v9 }
  0xb9   : > { %v271_v11 = vpack.c.bf16 %v268_v10, %v268_v10 }
  0xbb   : > { %274 = vst.msk [vmem:[%s225_s25 + $0x4] sm:$0xf] %vm272_vm1, %v271_v11 }
  0xbc   : > { %587 = shalt.err (!%p584_p0)
}
  0xbd   : > { %s653_s6 = smov 64   ;;  %s654_s1 = smov 4  }
  0xbe   : > { %426 = dma.vmem_to_hbm [thread:$0]  (%p754_p5), %s291_s26, 128, %s293_s28, %s276_s29, %s653_s6, %s653_s6, %s654_s1  }
  0xbf PF: > { %s307_s22 = sand.u32 1, %s626_s12   ;;  %p437_p3 = pnand %p394_p11, %p724_p6 }
  0xc0   : > { %s308_s27 = scalar_lea.sflag [#allocation4], %s307_s22 }
  0xc1   : > { %p438_p7 = pneg %p437_p3 }
  0xc3   : > { %621 = dma.done.wait (%p438_p7), %s308_s27, 128  }
  0xc4   : > { %623 = vsyncadd (%p438_p7), %s308_s27, 4294967168  ;;  %s20_s17 = sadd.s32 1, %s646_s17   ;;  %s841_s12 = smov %s630_s13 }
  0xc5   : > { %p17_p9 = scmp.ge.s32.totalorder %s20_s17, 4   ;;  %s842_s13 = smov %s634_s14 }
  0xc6   : > { %s843_s14 = smov %s763_s18  ;;  %s844_s15 = smov %s642_s16 }
  0xc7   : > { %s845_s16 = smov %s847_s5  ;;  %19 = sbr.rel (!%p17_p9) target bundleno = 9 (0x9), region = 81 }
  0xcc   :  { %314 = vsyncpa [#allocation3], 1 }
  0xcd   :  { %316 = vsyncpa [#allocation3 + $0x1], 1 }
  0xce   :  { %317 = vsyncpa [#allocation6], 1 }
  0xcf   :  { %318 = vsyncpa [#allocation4], 1 }
  0xd0   :  { %320 = vsyncpa [#allocation4 + $0x1], 1 }

</bundles_post_ra>
